<compile_context>
chip_gen: v5e
topology: v5e:2x2
jax: 0.10.0
libtpu: 0.0.40
codegen_flags: <defaults>
</compile_context>

<pallas_src>
import functools

import jax
import jax.numpy as jnp
from jax.experimental import pallas as pl
from jax.experimental.pallas import tpu as pltpu

_LANE = 128
_SUBLANE = 8
_MAX_ROW_TILE = 1024


def _round_up(x, m):
    return ((x + m - 1) // m) * m


def _tpu_defaults():
    """Best-effort (VMEM capacity, tensorcores-per-chip) query with safe fallbacks."""
    vmem_cap = None
    num_cores = 1
    try:
        info = pltpu.get_tpu_info()
        vmem_cap = getattr(info, "vmem_capacity_bytes", None)
        for name in ("num_cores", "tensor_cores", "core_count", "num_tensorcores"):
            v = getattr(info, name, None)
            if isinstance(v, int) and v > 0:
                num_cores = v
                break
    except Exception:
        pass
    if not isinstance(vmem_cap, int) or vmem_cap <= 0:
        vmem_cap = 64 << 20  # conservative (v7x-sized) default
    return vmem_cap, num_cores


def _vmem_limit_bytes(vmem_cap):
    # ~96 MiB scoped limit on 128-MiB parts (v5e/v6e); ~40 MiB on 64-MiB parts (v7x).
    if vmem_cap >= (100 << 20):
        return 96 << 20
    return max(16 << 20, min(40 << 20, int(vmem_cap * 0.625)))


def _choose_row_tile(rows, hb, itemsize, budget, num_cores):
    # Double-buffered in + out blocks plus f32 compute temporaries per row.
    per_row = 4 * hb * itemsize + 6 * hb * 4
    tile = max(_SUBLANE, budget // per_row)
    tile = min(tile, _MAX_ROW_TILE)
    if num_cores >= 2 and rows >= 2 * _SUBLANE:
        # Megacore: even number of grid steps (>= 2) so both TCs get equal work.
        steps = max(2, pl.cdiv(rows, tile))
        if steps % 2:
            steps += 1
        tile = _round_up(pl.cdiv(rows, steps), _SUBLANE)
        return min(tile, rows)
    if tile >= rows:
        return rows  # single full block (block dim == array dim is always legal)
    return max(_SUBLANE, (tile // _SUBLANE) * _SUBLANE)


# ----------------------------------------------------------------------------
# Kernels
# ----------------------------------------------------------------------------
def _layernorm_kernel(x_ref, alpha_ref, bias_ref, o_ref, *, eps):
    """Generic path: x_ref (row_tile, H) with H == full feature dim."""
    x = x_ref[...].astype(jnp.float32)
    h = x.shape[-1]
    mean = jnp.sum(x, axis=-1, keepdims=True) / h
    diff = x - mean
    var = jnp.sum(diff * diff, axis=-1, keepdims=True) / (h - 1)  # unbiased (N-1)
    std = jnp.sqrt(var)
    alpha = alpha_ref[...].astype(jnp.float32)
    bias = bias_ref[...].astype(jnp.float32)
    o_ref[...] = (alpha * diff / (std + eps) + bias).astype(o_ref.dtype)


def _layernorm_packed_kernel(x_ref, alpha_ref, bias_ref, seg_ref, o_ref, *, eps, h):
    """Packed path for h < 128: each 128-lane row holds 128//h logical rows.

    seg_ref is a (128,128) bf16 block-diagonal 0/1 matrix: (v @ seg) gives, for
    every lane, the sum over its h-lane segment (already broadcast).  The MXU is
    otherwise idle here; a bf16 hi/lo split keeps the sums at ~f32 accuracy.
    """
    x = x_ref[...].astype(jnp.float32)
    seg = seg_ref[...]

    def seg_sum(v):
        hi = v.astype(jnp.bfloat16)
        lo = (v - hi.astype(jnp.float32)).astype(jnp.bfloat16)
        return (jnp.dot(hi, seg, preferred_element_type=jnp.float32)
                + jnp.dot(lo, seg, preferred_element_type=jnp.float32))

    mean = seg_sum(x) / h
    diff = x - mean
    var = seg_sum(diff * diff) / (h - 1)  # unbiased (N-1), two-pass
    std = jnp.sqrt(var)
    alpha = alpha_ref[...].astype(jnp.float32)
    bias = bias_ref[...].astype(jnp.float32)
    o_ref[...] = (alpha * diff / (std + eps) + bias).astype(o_ref.dtype)


# ----------------------------------------------------------------------------
# Wrapper
# ----------------------------------------------------------------------------
def layer_norm_pallas(x2d, alpha, bias, *, eps=1e-6, row_tile=None):
    """x2d: (R, H) rows; alpha, bias: (H,).  Returns (R, H) in x2d.dtype."""
    R, H = x2d.shape
    assert H >= 2, "unbiased std (N-1) needs features >= 2"
    out_dtype = x2d.dtype
    itemsize = jnp.dtype(out_dtype).itemsize

    vmem_cap, num_cores = _tpu_defaults()
    vmem_limit = _vmem_limit_bytes(vmem_cap)
    budget = vmem_limit // 2

    # Packed path: keep loads/stores lane-dense when H < 128 by letting
    # g = 128 // H logical rows share one 128-lane physical row.
    g = _LANE // H if (H < _LANE and _LANE % H == 0) else 1
    packed = g > 1 and (R % g == 0) and (R >= g)

    if packed:
        rows, hb = R // g, _LANE
        x_in = x2d.reshape(rows, hb)                       # free (contiguous)
        alpha_in = jnp.tile(alpha, g).reshape(1, hb)
        bias_in = jnp.tile(bias, g).reshape(1, hb)
        lane = jnp.arange(_LANE, dtype=jnp.int32)
        seg = (lane[:, None] // H == lane[None, :] // H).astype(jnp.bfloat16)
        extra_inputs = (seg,)
        extra_specs = [pl.BlockSpec((_LANE, _LANE), lambda i: (0, 0))]
        kernel = functools.partial(_layernorm_packed_kernel, eps=eps, h=H)
    else:
        rows, hb = R, H
        x_in = x2d
        alpha_in = alpha.reshape(1, H)
        bias_in = bias.reshape(1, H)
        extra_inputs = ()
        extra_specs = []
        kernel = functools.partial(_layernorm_kernel, eps=eps)

    if row_tile is None:
        row_tile = _choose_row_tile(rows, hb, itemsize, budget, num_cores)
    row_tile = min(row_tile, rows)

    grid = (pl.cdiv(rows, row_tile),)  # partial last block is masked by Pallas

    matmul_flops = (4 * rows * _LANE * _LANE * 2) if packed else 0
    cost = pl.CostEstimate(
        flops=10 * rows * hb + matmul_flops,
        transcendentals=2 * rows * (hb if packed else 1),
        bytes_accessed=2 * rows * hb * itemsize + 2 * hb * 4,
    )

    out = pl.pallas_call(
        kernel,
        out_shape=jax.ShapeDtypeStruct((rows, hb), out_dtype),
        grid_spec=pltpu.PrefetchScalarGridSpec(
            num_scalar_prefetch=0,
            grid=grid,
            in_specs=[
                pl.BlockSpec((row_tile, hb), lambda i: (i, 0)),
                pl.BlockSpec((1, hb), lambda i: (0, 0)),
                pl.BlockSpec((1, hb), lambda i: (0, 0)),
                *extra_specs,
            ],
            out_specs=pl.BlockSpec((row_tile, hb), lambda i: (i, 0)),
        ),
        compiler_params=pltpu.CompilerParams(
            dimension_semantics=("parallel",),
            vmem_limit_bytes=vmem_limit,
        ),
        cost_estimate=cost,
    )(x_in, alpha_in, bias_in, *extra_inputs)

    if packed:
        out = out.reshape(R, H)                            # free (contiguous)
    return out


class DecoderPallas:
    """JAX/Pallas equivalent of the PyTorch Decoder module."""

    def __init__(self, features: int, layers=()):
        self.features = features
        self.layers = tuple(layers)  # externally supplied decoder blocks (none here)
        # LayerNormalization parameters (same init as the torch module).
        self.alpha = jnp.ones((features,), dtype=jnp.float32)
        self.bias = jnp.zeros((features,), dtype=jnp.float32)
        self.eps = 1e-6

    def __call__(self, x, encoder_output, src_mask, tgt_mask):
        for layer in self.layers:
            x = layer(x, encoder_output, src_mask, tgt_mask)
        B, S, H = x.shape
        out2d = layer_norm_pallas(
            x.reshape(B * S, H), self.alpha, self.bias, eps=self.eps
        )
        return out2d.reshape(B, S, H)


def _layernorm_ref(x, alpha, bias, eps=1e-6):
    mean = jnp.mean(x, axis=-1, keepdims=True)
    diff = x - mean
    var = jnp.sum(diff * diff, axis=-1, keepdims=True) / (x.shape[-1] - 1)
    std = jnp.sqrt(var)
    return alpha * diff / (std + eps) + bias


if __name__ == "__main__":
    key = jax.random.PRNGKey(0)
    batch, seq, hidden = 2, 16, 32
    kx, ke = jax.random.split(key)
    x = jax.random.normal(kx, (batch, seq, hidden), dtype=jnp.float32)
    encoder_output = jax.random.normal(ke, (batch, seq, hidden), dtype=jnp.float32)
    src_mask = jnp.ones((batch, 1, 1, seq), dtype=jnp.float32)
    tgt_mask = jnp.ones((batch, 1, seq, seq), dtype=jnp.float32)

    decoder = DecoderPallas(features=hidden, layers=())
    out = decoder(x, encoder_output, src_mask, tgt_mask)
    out = jax.block_until_ready(out)

    ref = _layernorm_ref(x, decoder.alpha, decoder.bias, eps=decoder.eps)
    assert out.shape == x.shape
    err = float(jnp.max(jnp.abs(out - ref)))
    assert err < 1e-3, f"mismatch vs reference: max abs err = {err}"
    print("KERNEL_OK")
</pallas_src>

<mosaic_0001>
module attributes {stable_mosaic.version = 11 : i64} {
  func.func @_layernorm_packed_kernel(%arg0: i32, %arg1: memref<8x128xf32, #tpu.memory_space<vmem>>, %arg2: memref<1x128xf32, #tpu.memory_space<vmem>>, %arg3: memref<1x128xf32, #tpu.memory_space<vmem>>, %arg4: memref<128x128xbf16, #tpu.memory_space<vmem>>, %arg5: memref<8x128xf32, #tpu.memory_space<vmem>>) attributes {dimension_semantics = [#tpu.dimension_semantics<parallel>], iteration_bounds = array<i64: 1>, scalar_prefetch = 0 : i64, scratch_operands = 0 : i64, tpu.core_type = #tpu.core_type<tc>, window_params = [{transform_indices = @transform_0, window_bounds = array<i64: 8, 128>}, {pipeline_mode = #tpu.pipeline_mode<synchronous>, transform_indices = @transform_1, window_bounds = array<i64: 1, 128>}, {pipeline_mode = #tpu.pipeline_mode<synchronous>, transform_indices = @transform_2, window_bounds = array<i64: 1, 128>}, {pipeline_mode = #tpu.pipeline_mode<synchronous>, transform_indices = @transform_3, window_bounds = array<i64: 128, 128>}, {transform_indices = @transform_4, window_bounds = array<i64: 8, 128>}]} {
    %c0 = arith.constant 0 : index
    %c0_0 = arith.constant 0 : index
    %0 = vector.load %arg1[%c0, %c0_0] : memref<8x128xf32, #tpu.memory_space<vmem>>, vector<8x128xf32>
    %c0_1 = arith.constant 0 : index
    %c0_2 = arith.constant 0 : index
    %1 = vector.load %arg4[%c0_1, %c0_2] : memref<128x128xbf16, #tpu.memory_space<vmem>>, vector<128x128xbf16>
    %2 = arith.truncf %0 : vector<8x128xf32> to vector<8x128xbf16>
    %3 = arith.extf %2 : vector<8x128xbf16> to vector<8x128xf32>
    %4 = arith.subf %0, %3 : vector<8x128xf32>
    %5 = arith.truncf %4 : vector<8x128xf32> to vector<8x128xbf16>
    %cst = arith.constant dense<0.000000e+00> : vector<8x128xf32>
    %6 = tpu.matmul %2, %1, %cst {dimension_numbers = #tpu.dot_dimension_numbers<[1], [0], [0], [1], [0, 0, 1, 1], [], []>} : vector<8x128xbf16>, vector<128x128xbf16>, vector<8x128xf32> -> vector<8x128xf32>
    %cst_3 = arith.constant dense<0.000000e+00> : vector<8x128xf32>
    %7 = tpu.matmul %5, %1, %cst_3 {dimension_numbers = #tpu.dot_dimension_numbers<[1], [0], [0], [1], [0, 0, 1, 1], [], []>} : vector<8x128xbf16>, vector<128x128xbf16>, vector<8x128xf32> -> vector<8x128xf32>
    %8 = arith.addf %6, %7 : vector<8x128xf32>
    %cst_4 = arith.constant 3.200000e+01 : f32
    %9 = vector.broadcast %cst_4 : f32 to vector<8x128xf32>
    %10 = arith.divf %8, %9 : vector<8x128xf32>
    %11 = arith.subf %0, %10 : vector<8x128xf32>
    %12 = arith.mulf %11, %11 : vector<8x128xf32>
    %13 = arith.truncf %12 : vector<8x128xf32> to vector<8x128xbf16>
    %14 = arith.extf %13 : vector<8x128xbf16> to vector<8x128xf32>
    %15 = arith.subf %12, %14 : vector<8x128xf32>
    %16 = arith.truncf %15 : vector<8x128xf32> to vector<8x128xbf16>
    %cst_5 = arith.constant dense<0.000000e+00> : vector<8x128xf32>
    %17 = tpu.matmul %13, %1, %cst_5 {dimension_numbers = #tpu.dot_dimension_numbers<[1], [0], [0], [1], [0, 0, 1, 1], [], []>} : vector<8x128xbf16>, vector<128x128xbf16>, vector<8x128xf32> -> vector<8x128xf32>
    %cst_6 = arith.constant dense<0.000000e+00> : vector<8x128xf32>
    %18 = tpu.matmul %16, %1, %cst_6 {dimension_numbers = #tpu.dot_dimension_numbers<[1], [0], [0], [1], [0, 0, 1, 1], [], []>} : vector<8x128xbf16>, vector<128x128xbf16>, vector<8x128xf32> -> vector<8x128xf32>
    %19 = arith.addf %17, %18 : vector<8x128xf32>
    %cst_7 = arith.constant 3.100000e+01 : f32
    %20 = vector.broadcast %cst_7 : f32 to vector<8x128xf32>
    %21 = arith.divf %19, %20 : vector<8x128xf32>
    %22 = math.sqrt %21 : vector<8x128xf32>
    %c0_8 = arith.constant 0 : index
    %c0_9 = arith.constant 0 : index
    %23 = vector.load %arg2[%c0_8, %c0_9] : memref<1x128xf32, #tpu.memory_space<vmem>>, vector<1x128xf32>
    %c0_10 = arith.constant 0 : index
    %c0_11 = arith.constant 0 : index
    %24 = vector.load %arg3[%c0_10, %c0_11] : memref<1x128xf32, #tpu.memory_space<vmem>>, vector<1x128xf32>
    %25 = vector.broadcast %23 : vector<1x128xf32> to vector<8x128xf32>
    %26 = arith.mulf %25, %11 : vector<8x128xf32>
    %cst_12 = arith.constant 9.99999997E-7 : f32
    %27 = vector.broadcast %cst_12 : f32 to vector<8x128xf32>
    %28 = arith.addf %22, %27 : vector<8x128xf32>
    %29 = arith.divf %26, %28 : vector<8x128xf32>
    %30 = vector.broadcast %24 : vector<1x128xf32> to vector<8x128xf32>
    %31 = arith.addf %29, %30 : vector<8x128xf32>
    %c0_13 = arith.constant 0 : index
    %c0_14 = arith.constant 0 : index
    %32 = vector.load %arg5[%c0_13, %c0_14] : memref<8x128xf32, #tpu.memory_space<vmem>>, vector<8x128xf32>
    tpu.vector_store %arg5[%c0_13, %c0_14], %31 {strides = array<i32>} : memref<8x128xf32, #tpu.memory_space<vmem>>, vector<8x128xf32>,
    return
  }
  func.func @transform_0(%arg0: i32) -> (i32, i32) {
    %c0_i32 = arith.constant 0 : i32
    %c0_i32_0 = arith.constant 0 : i32
    return %arg0, %c0_i32 : i32, i32
  }
  func.func @transform_1(%arg0: i32) -> (i32, i32) {
    %c0_i32 = arith.constant 0 : i32
    %c0_i32_0 = arith.constant 0 : i32
    %c0_i32_1 = arith.constant 0 : i32
    return %c0_i32, %c0_i32_0 : i32, i32
  }
  func.func @transform_2(%arg0: i32) -> (i32, i32) {
    %c0_i32 = arith.constant 0 : i32
    %c0_i32_0 = arith.constant 0 : i32
    %c0_i32_1 = arith.constant 0 : i32
    return %c0_i32, %c0_i32_0 : i32, i32
  }
  func.func @transform_3(%arg0: i32) -> (i32, i32) {
    %c0_i32 = arith.constant 0 : i32
    %c0_i32_0 = arith.constant 0 : i32
    %c0_i32_1 = arith.constant 0 : i32
    return %c0_i32, %c0_i32_0 : i32, i32
  }
  func.func @transform_4(%arg0: i32) -> (i32, i32) {
    %c0_i32 = arith.constant 0 : i32
    %c0_i32_0 = arith.constant 0 : i32
    return %arg0, %c0_i32 : i32, i32
  }
}

</mosaic_0001>

<bundles_post_ra>
// kernel: tpu_custom_call.1
= control target key start
LH: loop header
LB: loop body
LE: loop exit
PB: predicated region body
PF: predicated region fallthrough
CT: control target
= control target key end

     0   :  { %9 = vsyncpa [#allocation3], 0  ;;  %s469_s0 = inlined_call_operand.hbm [shape: f32[8,128], index: 0, kind: input, shape index: {}]   ;;  %s470_s1 = inlined_call_operand.hbm [shape: f32[1,128], index: 1, kind: input, shape index: {}]   ;;  %s471_s2 = inlined_call_operand.vmem [shape: f32[1,128], index: 2, kind: input, shape index: {}]   ;;  %s472_s3 = inlined_call_operand.hbm [shape: bf16[128,128], index: 3, kind: input, shape index: {}]   ;;  %s473_s4 = inlined_call_operand.hbm [shape: f32[8,128], index: 4, kind: output, shape index: {}]  }
   0x1   :  { %10 = vsyncpa [#allocation6], 0  ;;  %s28_s17 = sshll.u32 %s470_s1, 4  ;;  %s29_s17 = int_to_ptr.hbm [resolvable:$true] %s28_s17 }
   0x2   :  { %11 = vsyncpa [#allocation4], 0  ;;  %s421_s18 = smov [#allocation5]   ;;  %s17_s22 = sshll.u32 %s469_s0, 4  ;;  %s18_s22 = int_to_ptr.hbm [resolvable:$true] %s17_s22 }
   0x3   :  { %s30_s19 = sshll.u32 %s421_s18, 4  ;;  %s422_s23 = smov [#allocation2]   ;;  %s31_s19 = int_to_ptr.vmem [resolvable:$true] %s30_s19 }
   0x4   :  { %33 = dma.hbm_to_vmem [thread:$0]  %s29_s17, 16, %s31_s19, [#allocation6]  }
   0x5   :  { %s19_s24 = sshll.u32 %s422_s23, 4  ;;  %s40_s27 = sshll.u32 %s472_s3, 4  ;;  %s20_s24 = int_to_ptr.vmem [resolvable:$true] %s19_s24  ;;  %s41_s27 = int_to_ptr.hbm [resolvable:$true] %s40_s27 }
   0x6   :  { %22 = dma.hbm_to_vmem [thread:$0]  %s18_s22, 128, %s20_s24, [#allocation3]  }
   0x7   :  { %s423_s1 = smov [#allocation7]   ;;  %s424_s29 = smov 64  }
   0x8   :  { %s42_s28 = sshll.u32 %s423_s1, 4  ;;  %s425_s30 = smov 4   ;;  %s43_s28 = int_to_ptr.vmem [resolvable:$true] %s42_s28 }
   0x9   :  { %48 = dma.hbm_to_vmem [thread:$0]  %s41_s27, 1024, %s43_s28, [#allocation6], %s424_s29, %s424_s29, %s425_s30  }
   0xa   :  { %415 = dma.done.wait [#allocation3], 128  }
   0xb   :  { %416 = vsyncadd [#allocation3], 4294967168 }
   0xc   :  { %417 = dma.done.wait [#allocation6], 1040  }
   0xd   :  { %418 = vsyncadd [#allocation6], 4294966256  ;;  %v300_v0 = vld [vmem:[#allocation7 + $0x38] sm:$0xff]  ;;  %v299_v1 = vld [vmem:[#allocation7 + $0x30] sm:$0xff]  ;;  %v426_v13 = vmov 32.0   ;;  %v427_v32 = vmov 31.0  }
   0xe   :  { %130 = vmatpush.bf16.msra.mxu0 %v300_v0  ;;  %143 = vmatpush.bf16.msra.mxu1 %v300_v0  ;;  %v298_v2 = vld [vmem:[#allocation7 + $0x28] sm:$0xff]  ;;  %v297_v3 = vld [vmem:[#allocation7 + $0x20] sm:$0xff]  ;;  %v296_v4 = vld [vmem:[#allocation7 + $0x18] sm:$0xff]  ;;  %311 = vrcp.f32 %v426_v13  ;;  %s428_s5 = smov [#allocation8]   ;;  %s250_s9 = sshll.u32 %s473_s4, 4  ;;  %s251_s9 = int_to_ptr.hbm [resolvable:$true] %s250_s9 }
   0xf   :  { %183 = vmatpush.bf16.msra.mxu3 %v300_v0  ;;  %170 = vmatpush.bf16.msra.mxu2 %v300_v0  ;;  %v61_v5 = vld [vmem:[#allocation2] sm:$0xff]  ;;  %v294_v9 = vld [vmem:[#allocation7 + $0x8] sm:$0xff]  ;;  %v293_v11 = vld [vmem:[#allocation7] sm:$0xff]  ;;  %313 = vrcp.f32 %v427_v32  ;;  %s248_s6 = sshll.u32 %s428_s5, 4  ;;  %s249_s6 = int_to_ptr.vmem [resolvable:$true] %s248_s6 }
  0x10   :  { %v78_v6 = vpack.c.bf16 %v61_v5, %v61_v5  ;;  %v295_v7 = vld [vmem:[#allocation7 + $0x10] sm:$0xff]  ;;  %v309_v60 = vld [vmem:[#allocation5] ss:$0 sm:$0xff] }
  0x12   :  { %131 = vmatpush.bf16.msra.mxu0 %v299_v1  ;;  %144 = vmatpush.bf16.msra.mxu1 %v299_v1  ;;  %v79_v8 = vunpack.c.l.bf16 %v78_v6 }
  0x13   :  { %184 = vmatpush.bf16.msra.mxu3 %v299_v1  ;;  %171 = vmatpush.bf16.msra.mxu2 %v299_v1 }
  0x14   :  { %v80_v10 = vsub.f32 %v61_v5, %v79_v8  ;;  %v312_v14 = vpop.eup %311 }
  0x15   :  { %v157_v15 = vmul.f32 32.0, %v312_v14  ;;  %vm161_vm0 = vweird.f32 %v312_v14  ;;  %v314_v33 = vpop.eup %313 }
  0x16   :  { %132 = vmatpush.bf16.msra.mxu0 %v298_v2  ;;  %145 = vmatpush.bf16.msra.mxu1 %v298_v2  ;;  %v81_v12 = vpack.c.bf16 %v80_v10, %v80_v10  ;;  %v197_v34 = vmul.f32 31.0, %v314_v33  ;;  %vm201_vm1 = vweird.f32 %v314_v33 }
  0x17   :  { %185 = vmatpush.bf16.msra.mxu3 %v298_v2  ;;  %172 = vmatpush.bf16.msra.mxu2 %v298_v2  ;;  %v158_v16 = vsub.f32 1.0, %v157_v15 }
  0x18   :  { %v198_v35 = vsub.f32 1.0, %v197_v34 }
  0x19   :  { %v159_v17 = vmul.f32 %v312_v14, %v158_v16 }
  0x1a   :  { %133 = vmatpush.bf16.msra.mxu0 %v297_v3  ;;  %146 = vmatpush.bf16.msra.mxu1 %v297_v3  ;;  %v199_v36 = vmul.f32 %v314_v33, %v198_v35 }
  0x1b   :  { %186 = vmatpush.bf16.msra.mxu3 %v297_v3  ;;  %173 = vmatpush.bf16.msra.mxu2 %v297_v3  ;;  %v160_v18 = vadd.f32 %v312_v14, %v159_v17  ;;  %v310_v3 = vld [vmem:[%s471_s2] ss:$0 sm:$0xff] }
  0x1c   :  { %v200_v38 = vadd.f32 %v314_v33, %v199_v36 }
  0x1d   :  { %v162_v21 = vsel %vm161_vm0, %v312_v14, %v160_v18 }
  0x1e   :  { %134 = vmatpush.bf16.msra.mxu0 %v296_v4  ;;  %147 = vmatpush.bf16.msra.mxu1 %v296_v4  ;;  %v202_v40 = vsel %vm201_vm1, %v314_v33, %v200_v38 }
  0x1f   :  { %187 = vmatpush.bf16.msra.mxu3 %v296_v4  ;;  %174 = vmatpush.bf16.msra.mxu2 %v296_v4 }
  0x22   :  { %135 = vmatpush.bf16.msra.mxu0 %v295_v7  ;;  %148 = vmatpush.bf16.msra.mxu1 %v295_v7 }
  0x23   :  { %188 = vmatpush.bf16.msra.mxu3 %v295_v7  ;;  %175 = vmatpush.bf16.msra.mxu2 %v295_v7 }
  0x26   :  { %136 = vmatpush.bf16.msra.mxu0 %v294_v9  ;;  %149 = vmatpush.bf16.msra.mxu1 %v294_v9 }
  0x27   :  { %189 = vmatpush.bf16.msra.mxu3 %v294_v9  ;;  %176 = vmatpush.bf16.msra.mxu2 %v294_v9 }
  0x2a   :  { %137 = vmatpush.bf16.msra.mxu0 %v293_v11  ;;  %150 = vmatpush.bf16.msra.mxu1 %v293_v11 }
  0x2b   :  { %190 = vmatpush.bf16.msra.mxu3 %v293_v11  ;;  %177 = vmatpush.bf16.msra.mxu2 %v293_v11 }
  0x2d   :  { %138 = vmatmul.bf16.vlgmr.msra.gmra.mxu0 %v81_v12  ;;  %151 = vmatmul.bf16.vlgmr.msra.gmra.mxu1 %v78_v6 }
  0xaa   :  { %v139_v19 = vpop.f32.mrf.mxu0  ;;  %v152_v20 = vpop.f32.mrf.mxu1 }
  0xab   :  { %v153_v22 = vadd.f32 %v152_v20, %v139_v19 }
  0xad   :  { %v163_v23 = vmul.f32 %v162_v21, %v153_v22 }
  0xaf   :  { %v164_v24 = vsub.f32 %v61_v5, %v163_v23 }
  0xb1   :  { %v165_v25 = vmul.f32 %v164_v24, %v164_v24  ;;  %v221_v1 = vmul.f32 %v309_v60, %v164_v24 }
  0xb2   :  { %v141_v26 = vpop.f32.mrf.mxu0  ;;  %v154_v27 = vpop.f32.mrf.mxu1 }
  0xb3   :  { %v166_v28 = vpack.c.bf16 %v165_v25, %v165_v25 }
  0xb5   :  { %v167_v29 = vunpack.c.l.bf16 %v166_v28  ;;  %191 = vmatmul.bf16.vlgmr.msra.gmra.mxu3 %v166_v28 }
  0xb7   :  { %v168_v30 = vsub.f32 %v165_v25, %v167_v29 }
  0xb9   :  { %v169_v31 = vpack.c.bf16 %v168_v30, %v168_v30 }
  0xbb   :  { %178 = vmatmul.bf16.vlgmr.msra.gmra.mxu2 %v169_v31 }
 0x138   :  { %v192_v37 = vpop.f32.mrf.mxu3 }
 0x13e   :  { %v179_v39 = vpop.f32.mrf.mxu2 }
 0x13f   :  { %v193_v41 = vadd.f32 %v192_v37, %v179_v39 }
 0x140   :  { %v194_v42 = vpop.f32.mrf.mxu3 }
 0x141   :  { %v203_v43 = vmul.f32 %v202_v40, %v193_v41 }
 0x143   :  { %315 = vrsqrt.f32 %v203_v43  ;;  %vm211_vm2 = vcmp.eq.f32.partialorder %v203_v43, inf  ;;  %v214_v52 = vand.u32 2147483648, %v203_v43  ;;  %vm213_vm3 = vcmp.eq.f32.partialorder %v203_v43, 0.0 }
 0x146   :  { %v181_v44 = vpop.f32.mrf.mxu2 }
 0x149   :  { %v316_v45 = vpop.eup %315 }
 0x14a   :  { %v205_v46 = vmul.f32 %v316_v45, %v203_v43 }
 0x14c   :  { %v206_v47 = vmul.f32 %v316_v45, %v205_v46 }
 0x14e   :  { %v207_v48 = vmul.f32 0.5, %v206_v47 }
 0x150   :  { %v208_v49 = vsub.f32 1.5, %v207_v48 }
 0x152   :  { %v209_v50 = vmul.f32 %v316_v45, %v208_v49 }
 0x154   :  { %v210_v51 = vmul.f32 %v209_v50, %v203_v43 }
 0x156   :  { %v212_v53 = vsel %vm211_vm2, %v203_v43, %v210_v51 }
 0x157   :  { %v215_v54 = vsel %vm213_vm3, %v214_v52, %v212_v53 }
 0x158   :  { %v222_v55 = vadd.f32 1e-06, %v215_v54 }
 0x15a   :  { %317 = vrcp.f32 %v222_v55  ;;  %v234_v59 = vand.u32 2147483648, %v222_v55  ;;  %v232_v62 = vand.u32 2147483647, %v222_v55  ;;  %vm228_vm5 = vweird.f32 %v222_v55 }
 0x15c   :  { %v235_v0 = vor.u32 1.1754944e-38, %v234_v59  ;;  %vm233_vm7 = vcmp.eq.f32.partialorder %v232_v62, 8.507059e+37 }
 0x160   :  { %v318_v56 = vpop.eup %317 }
 0x161   :  { %v224_v57 = vmul.f32 %v318_v56, %v222_v55  ;;  %vm229_vm4 = vweird.f32 %v318_v56 }
 0x162   :  { %vm230_vm6 = vmor %vm228_vm5, %vm229_vm4 }
 0x163   :  { %v225_v58 = vsub.f32 1.0, %v224_v57 }
 0x165   :  { %v226_v61 = vmul.f32 %v318_v56, %v225_v58 }
 0x167   :  { %v227_v63 = vadd.f32 %v318_v56, %v226_v61 }
 0x169   :  { %v231_v2 = vsel %vm230_vm6, %v318_v56, %v227_v63 }
 0x16a   :  { %v236_v4 = vsel %vm233_vm7, %v235_v0, %v231_v2 }
 0x16b   :  { %v237_v5 = vmul.f32 %v236_v4, %v221_v1 }
 0x16d   :  { %v241_v6 = vadd.f32 %v310_v3, %v237_v5 }
 0x16f   :  { %242 = vst [vmem:[#allocation8] sm:$0xff] %v241_v6 }
 0x170   :  { %253 = dma.vmem_to_hbm [thread:$0]  %s249_s6, 128, %s251_s9, [#allocation4]  }
 0x171   :  { %419 = dma.done.wait [#allocation4], 128  }
 0x172   :  { %420 = vsyncadd [#allocation4], 4294967168 }
 0x173   :  { %258 = vsyncpa [#allocation3], 1 }
 0x174   :  { %259 = vsyncpa [#allocation6], 1 }
 0x175   :  { %260 = vsyncpa [#allocation4], 1 }

</bundles_post_ra>
